<compile_context>
chip_gen: v6e
topology: v6e:2x2x1
jax: 0.10.0
libtpu: 0.0.40
codegen_flags: <defaults>
</compile_context>

<pallas_src>
import jax
import jax.numpy as jnp
from jax.experimental import pallas as pl
from jax.experimental.pallas import tpu as pltpu

HIDDEN = 16
GATES = 4 * HIDDEN  # 64


def lstm_mlp_kernel(x_ref, p_ref, out_ref):
    # x_ref : (T*Bt, Dp)  time-major flattened inputs for this batch tile
    # p_ref : (Dp+48, 64) packed parameters (see wrapper for layout)
    # out   : (Bt, 1)
    TB, Dp = x_ref.shape
    Bt = out_ref.shape[0]
    T = TB // Bt
    H = HIDDEN

    # Packed-parameter row offsets (all matmul operands 8-row aligned).
    r_whh = Dp
    r_bias = Dp + 16
    r_w1 = Dp + 24
    r_vec = Dp + 40

    x = x_ref[...]                              # (T*Bt, Dp)
    wih = p_ref[0:Dp, :]                        # (Dp, 4H)  g-cols pre-scaled x2
    whh = p_ref[r_whh:r_whh + H, :]             # (H, 4H)   g-cols pre-scaled x2
    bias = p_ref[r_bias:r_bias + 1, :]          # (1, 4H)   g-cols pre-scaled x2
    w1 = p_ref[r_w1:r_w1 + H, :]                # (H, 64)   fc1 weight^T
    b1 = p_ref[r_vec:r_vec + 1, :]              # (1, 64)   fc1 bias
    w2 = p_ref[r_vec + 1:r_vec + 2, :]          # (1, 64)   fc2 weight (row)
    b2 = p_ref[r_vec + 2:r_vec + 3, :][:, 0:1]  # (1, 1)    fc2 bias

    # Hoisted input projection: one (T*Bt, Dp) x (Dp, 4H) matmul for all steps
    # (off the serial chain), bias folded in.  No in-kernel reshape.
    gx = jnp.dot(x, wih, preferred_element_type=jnp.float32) + bias  # (T*Bt,4H)

    h = jnp.zeros((Bt, H), jnp.float32)
    c = jnp.zeros((Bt, H), jnp.float32)

    # Fully unrolled recurrence (T static & small).  Only h @ W_hh^T plus the
    # gate elementwise math sits on the serial dependence chain.  Whh is
    # loop-invariant; Mosaic can keep it staged on the MXU across steps.
    # PyTorch gate order: i, f, g, o.
    for t in range(T):
        g = gx[t * Bt:(t + 1) * Bt, :] + jnp.dot(
            h, whh, preferred_element_type=jnp.float32)        # (Bt, 4H)
        s = jax.nn.sigmoid(g)              # single full-width EUP pass
        i_g = s[:, 0 * H:1 * H]
        f_g = s[:, 1 * H:2 * H]
        g_g = 2.0 * s[:, 2 * H:3 * H] - 1.0   # tanh(x) = 2*sigmoid(2x) - 1
        o_g = s[:, 3 * H:4 * H]
        c = f_g * c + i_g * g_g
        h = o_g * jnp.tanh(c)

    # Dropout(p=0.2) is identity at inference time.
    hid = jnp.maximum(
        jnp.dot(h, w1, preferred_element_type=jnp.float32) + b1, 0.0)  # (Bt,64)
    # fc2: (Bt,64) x (64,1) done as multiply + lane reduce (avoids transposing
    # the packed (1,64) weight row in-kernel).
    out_ref[...] = jnp.sum(hid * w2, axis=-1, keepdims=True) + b2      # (Bt,1)


def lstm_model_forward(x, params, *, block_b=256):
    """x: (B, T, D) float32  ->  (B, 1) float32"""
    B, T, D = x.shape
    H = HIDDEN

    bt = min(B, block_b)                 # batch-tile size
    nb = pl.cdiv(B, bt)                  # number of batch tiles (grid)
    Bp = nb * bt
    Dp = ((D + 7) // 8) * 8              # sublane-pad the feature dim

    # ---- x layout plumbing (wrapper side, XLA noise at these sizes) --------
    # (B,T,D) -> zero-pad -> (nb, bt, T, Dp) -> time-major -> (nb, T*bt, Dp)
    xp = jnp.zeros((Bp, T, Dp), jnp.float32).at[:B, :, :D].set(x)
    xp = jnp.transpose(xp.reshape(nb, bt, T, Dp), (0, 2, 1, 3))
    xp = xp.reshape(nb, T * bt, Dp)

    # ---- pack all parameters into one lane-dense (Dp+48, 64) buffer --------
    # g-gate columns of the LSTM weights/bias are pre-scaled by 2 so the
    # kernel can use tanh(x) = 2*sigmoid(2x) - 1 with a single EUP pass.
    g_scale = jnp.concatenate([
        jnp.ones((2 * H,), jnp.float32),
        jnp.full((H,), 2.0, jnp.float32),
        jnp.ones((H,), jnp.float32)])                               # (4H,)

    wih_t = jnp.zeros((Dp, GATES), jnp.float32).at[:D].set(
        params["w_ih"].T) * g_scale                                 # (Dp, 4H)
    whh_t = params["w_hh"].T * g_scale                              # (H, 4H)
    bias = ((params["b_ih"] + params["b_hh"]) * g_scale).reshape(1, GATES)
    w1_t = params["w1"].T                                           # (H, 64)
    b1 = params["b1"].reshape(1, 64)
    w2 = params["w2"].reshape(1, 64)
    b2 = jnp.pad(params["b2"].reshape(1, 1), ((0, 0), (0, GATES - 1)))

    def rows8(a):  # pad a 2-D section to a multiple of 8 rows (tile aligned)
        r = (-a.shape[0]) % 8
        return a if r == 0 else jnp.pad(a, ((0, r), (0, 0)))

    packed = jnp.concatenate(
        [rows8(wih_t),                       # rows [0, Dp)
         rows8(whh_t),                       # rows [Dp, Dp+16)
         rows8(bias),                        # row   Dp+16 (+pad to Dp+24)
         rows8(w1_t),                        # rows [Dp+24, Dp+40)
         rows8(jnp.concatenate([b1, w2, b2], axis=0))],   # rows Dp+40..42
        axis=0)                                           # (Dp+48, 64)

    out = pl.pallas_call(
        lstm_mlp_kernel,
        out_shape=jax.ShapeDtypeStruct((nb, bt, 1), jnp.float32),
        grid=(nb,),
        in_specs=[
            pl.BlockSpec((None, T * bt, Dp), lambda i: (i, 0, 0)),
            pl.BlockSpec(packed.shape, lambda i: (0, 0)),
        ],
        out_specs=pl.BlockSpec((None, bt, 1), lambda i: (i, 0, 0)),
        compiler_params=pltpu.CompilerParams(
            dimension_semantics=("parallel",)),   # shards across TCs on v7x
    )(xp, packed)

    return out.reshape(Bp, 1)[:B]


def reference_forward(x, params):
    """Pure-JAX reference of the PyTorch forward (inference mode)."""
    B, T, D = x.shape
    h = jnp.zeros((B, HIDDEN), jnp.float32)
    c = jnp.zeros((B, HIDDEN), jnp.float32)
    for t in range(T):
        g = (x[:, t, :] @ params["w_ih"].T + h @ params["w_hh"].T
             + params["b_ih"] + params["b_hh"])
        i_g = jax.nn.sigmoid(g[:, 0 * HIDDEN:1 * HIDDEN])
        f_g = jax.nn.sigmoid(g[:, 1 * HIDDEN:2 * HIDDEN])
        g_g = jnp.tanh(g[:, 2 * HIDDEN:3 * HIDDEN])
        o_g = jax.nn.sigmoid(g[:, 3 * HIDDEN:4 * HIDDEN])
        c = f_g * c + i_g * g_g
        h = o_g * jnp.tanh(c)
    hid = jnp.maximum(h @ params["w1"].T + params["b1"], 0.0)
    return hid @ params["w2"].T + params["b2"]


if __name__ == "__main__":
    B, T, D = 2, 8, 8   # batch, seq, input_size

    key = jax.random.PRNGKey(0)
    ks = jax.random.split(key, 9)
    scale = 0.25
    params = {
        "w_ih": scale * jax.random.normal(ks[0], (4 * HIDDEN, D), jnp.float32),
        "w_hh": scale * jax.random.normal(ks[1], (4 * HIDDEN, HIDDEN), jnp.float32),
        "b_ih": scale * jax.random.normal(ks[2], (4 * HIDDEN,), jnp.float32),
        "b_hh": scale * jax.random.normal(ks[3], (4 * HIDDEN,), jnp.float32),
        "w1": scale * jax.random.normal(ks[4], (64, HIDDEN), jnp.float32),
        "b1": scale * jax.random.normal(ks[5], (64,), jnp.float32),
        "w2": scale * jax.random.normal(ks[6], (1, 64), jnp.float32),
        "b2": scale * jax.random.normal(ks[7], (1,), jnp.float32),
    }
    x = jax.random.normal(ks[8], (B, T, D), jnp.float32)

    out = lstm_model_forward(x, params)
    out = jax.block_until_ready(out)

    ref = reference_forward(x, params)
    assert out.shape == (B, 1)
    # Slightly relaxed abs tol: tanh(x) = 2*sigmoid(2x)-1 fold + different f32
    # accumulation order of the hoisted projection (both ~1e-6 level).
    assert jnp.allclose(out, ref, atol=5e-5, rtol=1e-5), (out, ref)

    print("KERNEL_OK")
</pallas_src>

<mosaic_0001>
module attributes {stable_mosaic.version = 11 : i64} {
  func.func @lstm_mlp_kernel(%arg0: i32, %arg1: memref<1x16x8xf32, #tpu.memory_space<vmem>>, %arg2: memref<56x64xf32, #tpu.memory_space<vmem>>, %arg3: memref<1x2x1xf32, #tpu.memory_space<vmem>>) attributes {dimension_semantics = [#tpu.dimension_semantics<parallel>], iteration_bounds = array<i64: 1>, scalar_prefetch = 0 : i64, scratch_operands = 0 : i64, tpu.core_type = #tpu.core_type<tc>, window_params = [{transform_indices = @transform_0, window_bounds = array<i64: 1, 16, 8>}, {pipeline_mode = #tpu.pipeline_mode<synchronous>, transform_indices = @transform_1, window_bounds = array<i64: 56, 64>}, {transform_indices = @transform_2, window_bounds = array<i64: 1, 2, 1>}]} {
    %c0 = arith.constant 0 : index
    %c0_0 = arith.constant 0 : index
    %c0_1 = arith.constant 0 : index
    %0 = vector.load %arg1[%c0, %c0_0, %c0_1] : memref<1x16x8xf32, #tpu.memory_space<vmem>>, vector<1x16x8xf32>
    %1 = vector.shape_cast %0 : vector<1x16x8xf32> to vector<16x8xf32>
    %c0_2 = arith.constant 0 : index
    %c0_3 = arith.constant 0 : index
    %2 = vector.load %arg2[%c0_2, %c0_3] : memref<56x64xf32, #tpu.memory_space<vmem>>, vector<8x64xf32>
    %c8 = arith.constant 8 : index
    %c0_4 = arith.constant 0 : index
    %3 = vector.load %arg2[%c8, %c0_4] : memref<56x64xf32, #tpu.memory_space<vmem>>, vector<16x64xf32>
    %c24 = arith.constant 24 : index
    %c0_5 = arith.constant 0 : index
    %4 = vector.load %arg2[%c24, %c0_5] : memref<56x64xf32, #tpu.memory_space<vmem>>, vector<1x64xf32>
    %c32 = arith.constant 32 : index
    %c0_6 = arith.constant 0 : index
    %5 = vector.load %arg2[%c32, %c0_6] : memref<56x64xf32, #tpu.memory_space<vmem>>, vector<16x64xf32>
    %c48 = arith.constant 48 : index
    %c0_7 = arith.constant 0 : index
    %6 = vector.load %arg2[%c48, %c0_7] : memref<56x64xf32, #tpu.memory_space<vmem>>, vector<1x64xf32>
    %c49 = arith.constant 49 : index
    %c0_8 = arith.constant 0 : index
    %7 = vector.load %arg2[%c49, %c0_8] : memref<56x64xf32, #tpu.memory_space<vmem>>, vector<1x64xf32>
    %c50 = arith.constant 50 : index
    %c0_9 = arith.constant 0 : index
    %8 = vector.load %arg2[%c50, %c0_9] : memref<56x64xf32, #tpu.memory_space<vmem>>, vector<1x64xf32>
    %9 = vector.extract_strided_slice %8 {offsets = [0, 0], sizes = [1, 1], strides = [1, 1]} : vector<1x64xf32> to vector<1x1xf32>
    %cst = arith.constant dense<0.000000e+00> : vector<16x64xf32>
    %10 = tpu.matmul %1, %2, %cst {dimension_numbers = #tpu.dot_dimension_numbers<[1], [0], [0], [1], [0, 0, 1, 1], [], []>} : vector<16x8xf32>, vector<8x64xf32>, vector<16x64xf32> -> vector<16x64xf32>
    %11 = vector.broadcast %4 : vector<1x64xf32> to vector<16x64xf32>
    %12 = arith.addf %10, %11 : vector<16x64xf32>
    %cst_10 = arith.constant 0.000000e+00 : f32
    %13 = vector.broadcast %cst_10 : f32 to vector<2x16xf32>
    %cst_11 = arith.constant 0.000000e+00 : f32
    %14 = vector.broadcast %cst_11 : f32 to vector<2x16xf32>
    %15 = vector.extract_strided_slice %12 {offsets = [0, 0], sizes = [2, 64], strides = [1, 1]} : vector<16x64xf32> to vector<2x64xf32>
    %cst_12 = arith.constant dense<0.000000e+00> : vector<2x64xf32>
    %16 = tpu.matmul %13, %3, %cst_12 {dimension_numbers = #tpu.dot_dimension_numbers<[1], [0], [0], [1], [0, 0, 1, 1], [], []>} : vector<2x16xf32>, vector<16x64xf32>, vector<2x64xf32> -> vector<2x64xf32>
    %17 = arith.addf %15, %16 : vector<2x64xf32>
    %18 = arith.negf %17 : vector<2x64xf32>
    %19 = math.exp %18 : vector<2x64xf32>
    %cst_13 = arith.constant 1.000000e+00 : f32
    %20 = vector.broadcast %cst_13 : f32 to vector<2x64xf32>
    %21 = arith.addf %20, %19 : vector<2x64xf32>
    %22 = arith.divf %20, %21 : vector<2x64xf32>
    %23 = vector.extract_strided_slice %22 {offsets = [0, 0], sizes = [2, 16], strides = [1, 1]} : vector<2x64xf32> to vector<2x16xf32>
    %24 = vector.extract_strided_slice %22 {offsets = [0, 16], sizes = [2, 16], strides = [1, 1]} : vector<2x64xf32> to vector<2x16xf32>
    %25 = vector.extract_strided_slice %22 {offsets = [0, 32], sizes = [2, 16], strides = [1, 1]} : vector<2x64xf32> to vector<2x16xf32>
    %cst_14 = arith.constant 2.000000e+00 : f32
    %26 = vector.broadcast %cst_14 : f32 to vector<2x16xf32>
    %27 = arith.mulf %26, %25 : vector<2x16xf32>
    %cst_15 = arith.constant 1.000000e+00 : f32
    %28 = vector.broadcast %cst_15 : f32 to vector<2x16xf32>
    %29 = arith.subf %27, %28 : vector<2x16xf32>
    %30 = vector.extract_strided_slice %22 {offsets = [0, 48], sizes = [2, 16], strides = [1, 1]} : vector<2x64xf32> to vector<2x16xf32>
    %31 = arith.mulf %24, %14 : vector<2x16xf32>
    %32 = arith.mulf %23, %29 : vector<2x16xf32>
    %33 = arith.addf %31, %32 : vector<2x16xf32>
    %34 = math.tanh %33 : vector<2x16xf32>
    %35 = arith.mulf %30, %34 : vector<2x16xf32>
    %36 = vector.extract_strided_slice %12 {offsets = [2, 0], sizes = [2, 64], strides = [1, 1]} : vector<16x64xf32> to vector<2x64xf32>
    %cst_16 = arith.constant dense<0.000000e+00> : vector<2x64xf32>
    %37 = tpu.matmul %35, %3, %cst_16 {dimension_numbers = #tpu.dot_dimension_numbers<[1], [0], [0], [1], [0, 0, 1, 1], [], []>} : vector<2x16xf32>, vector<16x64xf32>, vector<2x64xf32> -> vector<2x64xf32>
    %38 = arith.addf %36, %37 : vector<2x64xf32>
    %39 = arith.negf %38 : vector<2x64xf32>
    %40 = math.exp %39 : vector<2x64xf32>
    %cst_17 = arith.constant 1.000000e+00 : f32
    %41 = vector.broadcast %cst_17 : f32 to vector<2x64xf32>
    %42 = arith.addf %41, %40 : vector<2x64xf32>
    %43 = arith.divf %41, %42 : vector<2x64xf32>
    %44 = vector.extract_strided_slice %43 {offsets = [0, 0], sizes = [2, 16], strides = [1, 1]} : vector<2x64xf32> to vector<2x16xf32>
    %45 = vector.extract_strided_slice %43 {offsets = [0, 16], sizes = [2, 16], strides = [1, 1]} : vector<2x64xf32> to vector<2x16xf32>
    %46 = vector.extract_strided_slice %43 {offsets = [0, 32], sizes = [2, 16], strides = [1, 1]} : vector<2x64xf32> to vector<2x16xf32>
    %cst_18 = arith.constant 2.000000e+00 : f32
    %47 = vector.broadcast %cst_18 : f32 to vector<2x16xf32>
    %48 = arith.mulf %47, %46 : vector<2x16xf32>
    %cst_19 = arith.constant 1.000000e+00 : f32
    %49 = vector.broadcast %cst_19 : f32 to vector<2x16xf32>
    %50 = arith.subf %48, %49 : vector<2x16xf32>
    %51 = vector.extract_strided_slice %43 {offsets = [0, 48], sizes = [2, 16], strides = [1, 1]} : vector<2x64xf32> to vector<2x16xf32>
    %52 = arith.mulf %45, %33 : vector<2x16xf32>
    %53 = arith.mulf %44, %50 : vector<2x16xf32>
    %54 = arith.addf %52, %53 : vector<2x16xf32>
    %55 = math.tanh %54 : vector<2x16xf32>
    %56 = arith.mulf %51, %55 : vector<2x16xf32>
    %57 = vector.extract_strided_slice %12 {offsets = [4, 0], sizes = [2, 64], strides = [1, 1]} : vector<16x64xf32> to vector<2x64xf32>
    %cst_20 = arith.constant dense<0.000000e+00> : vector<2x64xf32>
    %58 = tpu.matmul %56, %3, %cst_20 {dimension_numbers = #tpu.dot_dimension_numbers<[1], [0], [0], [1], [0, 0, 1, 1], [], []>} : vector<2x16xf32>, vector<16x64xf32>, vector<2x64xf32> -> vector<2x64xf32>
    %59 = arith.addf %57, %58 : vector<2x64xf32>
    %60 = arith.negf %59 : vector<2x64xf32>
    %61 = math.exp %60 : vector<2x64xf32>
    %cst_21 = arith.constant 1.000000e+00 : f32
    %62 = vector.broadcast %cst_21 : f32 to vector<2x64xf32>
    %63 = arith.addf %62, %61 : vector<2x64xf32>
    %64 = arith.divf %62, %63 : vector<2x64xf32>
    %65 = vector.extract_strided_slice %64 {offsets = [0, 0], sizes = [2, 16], strides = [1, 1]} : vector<2x64xf32> to vector<2x16xf32>
    %66 = vector.extract_strided_slice %64 {offsets = [0, 16], sizes = [2, 16], strides = [1, 1]} : vector<2x64xf32> to vector<2x16xf32>
    %67 = vector.extract_strided_slice %64 {offsets = [0, 32], sizes = [2, 16], strides = [1, 1]} : vector<2x64xf32> to vector<2x16xf32>
    %cst_22 = arith.constant 2.000000e+00 : f32
    %68 = vector.broadcast %cst_22 : f32 to vector<2x16xf32>
    %69 = arith.mulf %68, %67 : vector<2x16xf32>
    %cst_23 = arith.constant 1.000000e+00 : f32
    %70 = vector.broadcast %cst_23 : f32 to vector<2x16xf32>
    %71 = arith.subf %69, %70 : vector<2x16xf32>
    %72 = vector.extract_strided_slice %64 {offsets = [0, 48], sizes = [2, 16], strides = [1, 1]} : vector<2x64xf32> to vector<2x16xf32>
    %73 = arith.mulf %66, %54 : vector<2x16xf32>
    %74 = arith.mulf %65, %71 : vector<2x16xf32>
    %75 = arith.addf %73, %74 : vector<2x16xf32>
    %76 = math.tanh %75 : vector<2x16xf32>
    %77 = arith.mulf %72, %76 : vector<2x16xf32>
    %78 = vector.extract_strided_slice %12 {offsets = [6, 0], sizes = [2, 64], strides = [1, 1]} : vector<16x64xf32> to vector<2x64xf32>
    %cst_24 = arith.constant dense<0.000000e+00> : vector<2x64xf32>
    %79 = tpu.matmul %77, %3, %cst_24 {dimension_numbers = #tpu.dot_dimension_numbers<[1], [0], [0], [1], [0, 0, 1, 1], [], []>} : vector<2x16xf32>, vector<16x64xf32>, vector<2x64xf32> -> vector<2x64xf32>
    %80 = arith.addf %78, %79 : vector<2x64xf32>
    %81 = arith.negf %80 : vector<2x64xf32>
    %82 = math.exp %81 : vector<2x64xf32>
    %cst_25 = arith.constant 1.000000e+00 : f32
    %83 = vector.broadcast %cst_25 : f32 to vector<2x64xf32>
    %84 = arith.addf %83, %82 : vector<2x64xf32>
    %85 = arith.divf %83, %84 : vector<2x64xf32>
    %86 = vector.extract_strided_slice %85 {offsets = [0, 0], sizes = [2, 16], strides = [1, 1]} : vector<2x64xf32> to vector<2x16xf32>
    %87 = vector.extract_strided_slice %85 {offsets = [0, 16], sizes = [2, 16], strides = [1, 1]} : vector<2x64xf32> to vector<2x16xf32>
    %88 = vector.extract_strided_slice %85 {offsets = [0, 32], sizes = [2, 16], strides = [1, 1]} : vector<2x64xf32> to vector<2x16xf32>
    %cst_26 = arith.constant 2.000000e+00 : f32
    %89 = vector.broadcast %cst_26 : f32 to vector<2x16xf32>
    %90 = arith.mulf %89, %88 : vector<2x16xf32>
    %cst_27 = arith.constant 1.000000e+00 : f32
    %91 = vector.broadcast %cst_27 : f32 to vector<2x16xf32>
    %92 = arith.subf %90, %91 : vector<2x16xf32>
    %93 = vector.extract_strided_slice %85 {offsets = [0, 48], sizes = [2, 16], strides = [1, 1]} : vector<2x64xf32> to vector<2x16xf32>
    %94 = arith.mulf %87, %75 : vector<2x16xf32>
    %95 = arith.mulf %86, %92 : vector<2x16xf32>
    %96 = arith.addf %94, %95 : vector<2x16xf32>
    %97 = math.tanh %96 : vector<2x16xf32>
    %98 = arith.mulf %93, %97 : vector<2x16xf32>
    %99 = vector.extract_strided_slice %12 {offsets = [8, 0], sizes = [2, 64], strides = [1, 1]} : vector<16x64xf32> to vector<2x64xf32>
    %cst_28 = arith.constant dense<0.000000e+00> : vector<2x64xf32>
    %100 = tpu.matmul %98, %3, %cst_28 {dimension_numbers = #tpu.dot_dimension_numbers<[1], [0], [0], [1], [0, 0, 1, 1], [], []>} : vector<2x16xf32>, vector<16x64xf32>, vector<2x64xf32> -> vector<2x64xf32>
    %101 = arith.addf %99, %100 : vector<2x64xf32>
    %102 = arith.negf %101 : vector<2x64xf32>
    %103 = math.exp %102 : vector<2x64xf32>
    %cst_29 = arith.constant 1.000000e+00 : f32
    %104 = vector.broadcast %cst_29 : f32 to vector<2x64xf32>
    %105 = arith.addf %104, %103 : vector<2x64xf32>
    %106 = arith.divf %104, %105 : vector<2x64xf32>
    %107 = vector.extract_strided_slice %106 {offsets = [0, 0], sizes = [2, 16], strides = [1, 1]} : vector<2x64xf32> to vector<2x16xf32>
    %108 = vector.extract_strided_slice %106 {offsets = [0, 16], sizes = [2, 16], strides = [1, 1]} : vector<2x64xf32> to vector<2x16xf32>
    %109 = vector.extract_strided_slice %106 {offsets = [0, 32], sizes = [2, 16], strides = [1, 1]} : vector<2x64xf32> to vector<2x16xf32>
    %cst_30 = arith.constant 2.000000e+00 : f32
    %110 = vector.broadcast %cst_30 : f32 to vector<2x16xf32>
    %111 = arith.mulf %110, %109 : vector<2x16xf32>
    %cst_31 = arith.constant 1.000000e+00 : f32
    %112 = vector.broadcast %cst_31 : f32 to vector<2x16xf32>
    %113 = arith.subf %111, %112 : vector<2x16xf32>
    %114 = vector.extract_strided_slice %106 {offsets = [0, 48], sizes = [2, 16], strides = [1, 1]} : vector<2x64xf32> to vector<2x16xf32>
    %115 = arith.mulf %108, %96 : vector<2x16xf32>
    %116 = arith.mulf %107, %113 : vector<2x16xf32>
    %117 = arith.addf %115, %116 : vector<2x16xf32>
    %118 = math.tanh %117 : vector<2x16xf32>
    %119 = arith.mulf %114, %118 : vector<2x16xf32>
    %120 = vector.extract_strided_slice %12 {offsets = [10, 0], sizes = [2, 64], strides = [1, 1]} : vector<16x64xf32> to vector<2x64xf32>
    %cst_32 = arith.constant dense<0.000000e+00> : vector<2x64xf32>
    %121 = tpu.matmul %119, %3, %cst_32 {dimension_numbers = #tpu.dot_dimension_numbers<[1], [0], [0], [1], [0, 0, 1, 1], [], []>} : vector<2x16xf32>, vector<16x64xf32>, vector<2x64xf32> -> vector<2x64xf32>
    %122 = arith.addf %120, %121 : vector<2x64xf32>
    %123 = arith.negf %122 : vector<2x64xf32>
    %124 = math.exp %123 : vector<2x64xf32>
    %cst_33 = arith.constant 1.000000e+00 : f32
    %125 = vector.broadcast %cst_33 : f32 to vector<2x64xf32>
    %126 = arith.addf %125, %124 : vector<2x64xf32>
    %127 = arith.divf %125, %126 : vector<2x64xf32>
    %128 = vector.extract_strided_slice %127 {offsets = [0, 0], sizes = [2, 16], strides = [1, 1]} : vector<2x64xf32> to vector<2x16xf32>
    %129 = vector.extract_strided_slice %127 {offsets = [0, 16], sizes = [2, 16], strides = [1, 1]} : vector<2x64xf32> to vector<2x16xf32>
    %130 = vector.extract_strided_slice %127 {offsets = [0, 32], sizes = [2, 16], strides = [1, 1]} : vector<2x64xf32> to vector<2x16xf32>
    %cst_34 = arith.constant 2.000000e+00 : f32
    %131 = vector.broadcast %cst_34 : f32 to vector<2x16xf32>
    %132 = arith.mulf %131, %130 : vector<2x16xf32>
    %cst_35 = arith.constant 1.000000e+00 : f32
    %133 = vector.broadcast %cst_35 : f32 to vector<2x16xf32>
    %134 = arith.subf %132, %133 : vector<2x16xf32>
    %135 = vector.extract_strided_slice %127 {offsets = [0, 48], sizes = [2, 16], strides = [1, 1]} : vector<2x64xf32> to vector<2x16xf32>
    %136 = arith.mulf %129, %117 : vector<2x16xf32>
    %137 = arith.mulf %128, %134 : vector<2x16xf32>
    %138 = arith.addf %136, %137 : vector<2x16xf32>
    %139 = math.tanh %138 : vector<2x16xf32>
    %140 = arith.mulf %135, %139 : vector<2x16xf32>
    %141 = vector.extract_strided_slice %12 {offsets = [12, 0], sizes = [2, 64], strides = [1, 1]} : vector<16x64xf32> to vector<2x64xf32>
    %cst_36 = arith.constant dense<0.000000e+00> : vector<2x64xf32>
    %142 = tpu.matmul %140, %3, %cst_36 {dimension_numbers = #tpu.dot_dimension_numbers<[1], [0], [0], [1], [0, 0, 1, 1], [], []>} : vector<2x16xf32>, vector<16x64xf32>, vector<2x64xf32> -> vector<2x64xf32>
    %143 = arith.addf %141, %142 : vector<2x64xf32>
    %144 = arith.negf %143 : vector<2x64xf32>
    %145 = math.exp %144 : vector<2x64xf32>
    %cst_37 = arith.constant 1.000000e+00 : f32
    %146 = vector.broadcast %cst_37 : f32 to vector<2x64xf32>
    %147 = arith.addf %146, %145 : vector<2x64xf32>
    %148 = arith.divf %146, %147 : vector<2x64xf32>
    %149 = vector.extract_strided_slice %148 {offsets = [0, 0], sizes = [2, 16], strides = [1, 1]} : vector<2x64xf32> to vector<2x16xf32>
    %150 = vector.extract_strided_slice %148 {offsets = [0, 16], sizes = [2, 16], strides = [1, 1]} : vector<2x64xf32> to vector<2x16xf32>
    %151 = vector.extract_strided_slice %148 {offsets = [0, 32], sizes = [2, 16], strides = [1, 1]} : vector<2x64xf32> to vector<2x16xf32>
    %cst_38 = arith.constant 2.000000e+00 : f32
    %152 = vector.broadcast %cst_38 : f32 to vector<2x16xf32>
    %153 = arith.mulf %152, %151 : vector<2x16xf32>
    %cst_39 = arith.constant 1.000000e+00 : f32
    %154 = vector.broadcast %cst_39 : f32 to vector<2x16xf32>
    %155 = arith.subf %153, %154 : vector<2x16xf32>
    %156 = vector.extract_strided_slice %148 {offsets = [0, 48], sizes = [2, 16], strides = [1, 1]} : vector<2x64xf32> to vector<2x16xf32>
    %157 = arith.mulf %150, %138 : vector<2x16xf32>
    %158 = arith.mulf %149, %155 : vector<2x16xf32>
    %159 = arith.addf %157, %158 : vector<2x16xf32>
    %160 = math.tanh %159 : vector<2x16xf32>
    %161 = arith.mulf %156, %160 : vector<2x16xf32>
    %162 = vector.extract_strided_slice %12 {offsets = [14, 0], sizes = [2, 64], strides = [1, 1]} : vector<16x64xf32> to vector<2x64xf32>
    %cst_40 = arith.constant dense<0.000000e+00> : vector<2x64xf32>
    %163 = tpu.matmul %161, %3, %cst_40 {dimension_numbers = #tpu.dot_dimension_numbers<[1], [0], [0], [1], [0, 0, 1, 1], [], []>} : vector<2x16xf32>, vector<16x64xf32>, vector<2x64xf32> -> vector<2x64xf32>
    %164 = arith.addf %162, %163 : vector<2x64xf32>
    %165 = arith.negf %164 : vector<2x64xf32>
    %166 = math.exp %165 : vector<2x64xf32>
    %cst_41 = arith.constant 1.000000e+00 : f32
    %167 = vector.broadcast %cst_41 : f32 to vector<2x64xf32>
    %168 = arith.addf %167, %166 : vector<2x64xf32>
    %169 = arith.divf %167, %168 : vector<2x64xf32>
    %170 = vector.extract_strided_slice %169 {offsets = [0, 0], sizes = [2, 16], strides = [1, 1]} : vector<2x64xf32> to vector<2x16xf32>
    %171 = vector.extract_strided_slice %169 {offsets = [0, 16], sizes = [2, 16], strides = [1, 1]} : vector<2x64xf32> to vector<2x16xf32>
    %172 = vector.extract_strided_slice %169 {offsets = [0, 32], sizes = [2, 16], strides = [1, 1]} : vector<2x64xf32> to vector<2x16xf32>
    %cst_42 = arith.constant 2.000000e+00 : f32
    %173 = vector.broadcast %cst_42 : f32 to vector<2x16xf32>
    %174 = arith.mulf %173, %172 : vector<2x16xf32>
    %cst_43 = arith.constant 1.000000e+00 : f32
    %175 = vector.broadcast %cst_43 : f32 to vector<2x16xf32>
    %176 = arith.subf %174, %175 : vector<2x16xf32>
    %177 = vector.extract_strided_slice %169 {offsets = [0, 48], sizes = [2, 16], strides = [1, 1]} : vector<2x64xf32> to vector<2x16xf32>
    %178 = arith.mulf %171, %159 : vector<2x16xf32>
    %179 = arith.mulf %170, %176 : vector<2x16xf32>
    %180 = arith.addf %178, %179 : vector<2x16xf32>
    %181 = math.tanh %180 : vector<2x16xf32>
    %182 = arith.mulf %177, %181 : vector<2x16xf32>
    %cst_44 = arith.constant dense<0.000000e+00> : vector<2x64xf32>
    %183 = tpu.matmul %182, %5, %cst_44 {dimension_numbers = #tpu.dot_dimension_numbers<[1], [0], [0], [1], [0, 0, 1, 1], [], []>} : vector<2x16xf32>, vector<16x64xf32>, vector<2x64xf32> -> vector<2x64xf32>
    %184 = vector.broadcast %6 : vector<1x64xf32> to vector<2x64xf32>
    %185 = arith.addf %183, %184 : vector<2x64xf32>
    %cst_45 = arith.constant 0.000000e+00 : f32
    %186 = vector.broadcast %cst_45 : f32 to vector<2x64xf32>
    %187 = arith.maximumf %185, %186 : vector<2x64xf32>
    %188 = vector.broadcast %7 : vector<1x64xf32> to vector<2x64xf32>
    %189 = arith.mulf %187, %188 : vector<2x64xf32>
    %cst_46 = arith.constant dense<0.000000e+00> : vector<2xf32>
    %190 = vector.multi_reduction <add>, %189, %cst_46 [1] : vector<2x64xf32> to vector<2xf32>
    %191 = vector.shape_cast %190 : vector<2xf32> to vector<2x1xf32>
    %192 = vector.broadcast %9 : vector<1x1xf32> to vector<2x1xf32>
    %193 = arith.addf %191, %192 : vector<2x1xf32>
    %c0_47 = arith.constant 0 : index
    %c0_48 = arith.constant 0 : index
    %c0_49 = arith.constant 0 : index
    %194 = vector.load %arg3[%c0_47, %c0_48, %c0_49] : memref<1x2x1xf32, #tpu.memory_space<vmem>>, vector<1x2x1xf32>
    %195 = vector.shape_cast %194 : vector<1x2x1xf32> to vector<2x1xf32>
    %196 = vector.shape_cast %193 : vector<2x1xf32> to vector<1x2x1xf32>
    tpu.vector_store %arg3[%c0_47, %c0_48, %c0_49], %196 {strides = array<i32>} : memref<1x2x1xf32, #tpu.memory_space<vmem>>, vector<1x2x1xf32>,
    return
  }
  func.func @transform_0(%arg0: i32) -> (i32, i32, i32) {
    %c0_i32 = arith.constant 0 : i32
    %c0_i32_0 = arith.constant 0 : i32
    %c0_i32_1 = arith.constant 0 : i32
    return %arg0, %c0_i32, %c0_i32_0 : i32, i32, i32
  }
  func.func @transform_1(%arg0: i32) -> (i32, i32) {
    %c0_i32 = arith.constant 0 : i32
    %c0_i32_0 = arith.constant 0 : i32
    %c0_i32_1 = arith.constant 0 : i32
    return %c0_i32, %c0_i32_0 : i32, i32
  }
  func.func @transform_2(%arg0: i32) -> (i32, i32, i32) {
    %c0_i32 = arith.constant 0 : i32
    %c0_i32_0 = arith.constant 0 : i32
    %c0_i32_1 = arith.constant 0 : i32
    return %arg0, %c0_i32, %c0_i32_0 : i32, i32, i32
  }
}

</mosaic_0001>

<bundles_post_ra>
// kernel: tpu_custom_call.1
= control target key start
LH: loop header
LB: loop body
LE: loop exit
PB: predicated region body
PF: predicated region fallthrough
CT: control target
= control target key end

     0   :  { %7 = vsyncpa [#allocation3], 0  ;;  %s1282_s9 = smov [#allocation2]   ;;  %s1427_s0 = inlined_call_operand.vmem [shape: f32[1,16,8], index: 0, kind: input, shape index: {}]   ;;  %s1428_s1 = inlined_call_operand.hbm [shape: f32[56,64], index: 1, kind: input, shape index: {}]   ;;  %s1429_s2 = inlined_call_operand.vmem [shape: f32[1,2,1], index: 2, kind: output, shape index: {}]  }
   0x1   :  { %s15_s10 = sshll.u32 %s1282_s9, 4  ;;  %s16_s10 = int_to_ptr.vmem [resolvable:$true] %s15_s10 }
   0x2   :  { %s1268_s11 = scalar_lea.vmem %s16_s10, 896  ;;  %p1273_p1 = scmp.lt.s32.totalorder %s16_s10, %s16_s10 }
   0x3   :  { %p1269_p0 = scmp.ne.s32.totalorder %s16_s10, %s1268_s11  ;;  %p1274_p2 = scmp.lt.s32.totalorder %s1268_s11, %s1268_s11 }
   0x5   :  { %p1275_p3 = por %p1274_p2, %p1273_p1 }
   0x7   :  { %p1276_p4 = pnand %p1275_p3, %p1269_p0 }
   0x9   :  { %1279 = shalt.err (!%p1276_p4)
}
   0xa   :  { %s1283_s12 = smov 128   ;;  %s1284_s13 = smov 8  }
   0xb   :  { %21 = dma.hbm_to_vmem [thread:$0]  %s1428_s1, 896, %s16_s10, [#allocation3], %s1283_s12, %s1283_s12, %s1284_s13  }
   0xc   :  { %1280 = dma.done.wait [#allocation3], 896  }
   0xd   :  { %1281 = vsyncadd [#allocation3], 4294966400  ;;  %v1285_v0 = vmov 0.0   ;;  %vm1286_vm0 = vmmov 0   ;;  %vm40_vm1 = vcmask 64512   ;;  %v27_v1 = vld [vmem:[#allocation2] sm:$0xff] }
   0xe   :  { %1140 = vmatprep.subr.mxu1 %v1285_v0  ;;  %1144 = vmatprep.mubr.msk.f32.mxu1 %vm1286_vm0, %v1285_v0  ;;  %v25_v2 = vld [vmem:[%s1427_s0] sm:$0xff]  ;;  %v1315_v3 = vld [vmem:[#allocation2 + $0x10] sm:$0xff]  ;;  %v26_v4 = vld [vmem:[%s1427_s0 + $0x8] sm:$0xff]  ;;  %s1287_s0 = smov 96   ;;  %s1288_s19 = smov 16   ;;  %vm122_vm2 = vcmask 130048  }
   0xf   :  { %1135 = vmatprep.subr.mxu0 %v27_v1  ;;  %1137 = vmatprep.mubr.msk.f32.mxu0 %vm40_vm1, %v25_v2  ;;  %v1320_v5 = vld [vmem:[#allocation2 + $0x8] sm:$0xff]  ;;  %v1075_v6 = vld [vmem:[#allocation2 + $0x18] ss:$0 sm:$0xff]  ;;  %s1289_s20 = smov 32   ;;  %s1290_s21 = smov 80   ;;  %vm1059_vm3 = vcmask 517120  }
  0x10   :  { %1136 = vmatpush3.msra.mxu0 %v27_v1  ;;  %1141 = vmatpush3.msra.mxu1 %v1315_v3  ;;  %vm1068_vm4 = vcmask 1024  }
  0x11   :  { %1138 = vmatmul.mubr.msk.f32.vlgmr.msra.gmra.mxu0 %vm40_vm1, %v26_v4  ;;  %1142 = vmatprep.subr.mxu1 %v1285_v0 }
  0x12   :  { %1143 = vmatpush3.msra.mxu1 %v1320_v5  ;;  %1147 = vmatprep.subr.mxu0 %v1285_v0 }
  0x13   :  { %1145 = vmatmul.mubr.f32.vlgmr.msra.gmra.mxu1 %v1285_v0  ;;  %1148 = vmatpush3.msra.mxu0 %v1315_v3 }
  0x14   :  { %1149 = vmatprep.subr.mxu0 %v1285_v0  ;;  %1151 = vmatprep.mubr.msk.f32.mxu0 %vm1286_vm0, %v1285_v0 }
  0x15   :  { %1150 = vmatpush3.msra.mxu0 %v1320_v5  ;;  %1154 = vmatprep.subr.mxu1 %v1285_v0 }
  0x16   :  { %1155 = vmatpush3.msra.mxu1 %v1315_v3  ;;  %1158 = vmatprep.mubr.msk.f32.mxu1 %vm1286_vm0, %v1285_v0 }
  0x17   :  { %1156 = vmatprep.subr.mxu1 %v1285_v0  ;;  %1161 = vmatprep.subr.mxu0 %v1285_v0 }
  0x18   :  { %1157 = vmatpush3.msra.mxu1 %v1320_v5 }
  0x19   :  { %1168 = vmatprep.subr.mxu1 %v1285_v0 }
  0xd1   :  { %v1139_v7 = vpop.f32.mrf.mxu0 }
  0xd2   :  { %v1340_v8 = vadd.f32 %v1139_v7, %v1075_v6 }
  0xd3   :  { %v113_v9 = vpop.f32.mrf.mxu0  ;;  %v192_v10 = vpop.f32.mrf.mxu1 }
  0xd4   :  { %v1342_v11 = vadd.f32 %v1075_v6, %v113_v9 }
  0xd5   :  { %v1146_v12 = vpop.f32.mrf.mxu1 }
  0xd6   :  { %v196_v13 = vadd.f32 %v192_v10, %v1342_v11 }
  0xd8   :  { %v1078_v14 = vmul.f32 -1.442695, %v196_v13 }
  0xda   :  { %1212 = vpow2.f32 %v1078_v14 }
  0xe7   :  { %v1213_v15 = vpop.eup %1212 }
  0xe8   :  { %v200_v16 = vadd.f32 1.0, %v1213_v15 }
  0xea   :  { %1214 = vrcp.f32 %v200_v16 }
  0xf7   :  { %v1215_v17 = vpop.eup %1214 }
  0xf8   :  { %v203_v18 = vmul.f32 2.0, %v1215_v17  ;;  %v205_v22 = vmul.f32 0.0, %v1215_v17 }
  0xfa   :  { %v1079_v19 = vadd.f32 -1.0, %v203_v18 }
  0xfc   :  { %207 = vrot.lane.b32.xlu0 %v1079_v19, %s1287_s0 }
 0x16e   :  { %v208_v20 = vpop.permute.xlu0 %207 }
 0x16f   :  { %v210_v21 = vmul.f32 %v1215_v17, %v208_v20 }
 0x171   :  { %212 = vrot.lane.b32.xlu0 %v210_v21, %s1288_s19 }
 0x1e3   :  { %v213_v23 = vpop.permute.xlu0 %212 }
 0x1e4   :  { %v215_v24 = vadd.f32 %v213_v23, %v205_v22 }
 0x1e6   :  { %1216 = vtanh.f32 %v215_v24  ;;  %v310_v41 = vrot.slane %v215_v24, 6 }
 0x1f3   :  { %v1217_v25 = vpop.eup %1216 }
 0x1f4   :  { %218 = vrot.lane.b32.xlu1 %v1217_v25, %s1289_s20 }
 0x266   :  { %v219_v26 = vpop.permute.xlu1 %218 }
 0x267   :  { %v221_v27 = vmul.f32 %v1215_v17, %v219_v26 }
 0x269   :  { %223 = vrot.lane.b32.xlu1 %v221_v27, %s1290_s21 }
 0x2db   :  { %v224_v28 = vpop.permute.xlu1 %223 }
 0x2dc   :  { %1152 = vmatmul.mubr.msk.f32.vlgmr.msra.gmra.mxu0 %vm122_vm2, %v224_v28 }
 0x2dd   :  { %1162 = vmatpush3.msra.mxu0 %v1315_v3  ;;  %1165 = vmatprep.mubr.msk.f32.mxu0 %vm1286_vm0, %v1285_v0 }
 0x2de   :  { %1163 = vmatprep.subr.mxu0 %v1285_v0 }
 0x2df   :  { %1164 = vmatpush3.msra.mxu0 %v1320_v5 }
 0x2e0   :  { %1175 = vmatprep.subr.mxu0 %v1285_v0 }
 0x39c   :  { %v293_v29 = vpop.f32.mrf.mxu0 }
 0x39d   :  { %v298_v30 = vrot.slane %v293_v29, 6 }
 0x39e   :  { %v1153_v31 = vpop.f32.mrf.mxu0 }
 0x39f   :  { %v300_v32 = vadd.f32 %v298_v30, %v1342_v11 }
 0x3a1   :  { %v1081_v33 = vmul.f32 -1.442695, %v300_v32 }
 0x3a3   :  { %1218 = vpow2.f32 %v1081_v33 }
 0x3b0   :  { %v1219_v34 = vpop.eup %1218 }
 0x3b1   :  { %v304_v35 = vadd.f32 1.0, %v1219_v34 }
 0x3b3   :  { %1220 = vrcp.f32 %v304_v35 }
 0x3c0   :  { %v1221_v36 = vpop.eup %1220 }
 0x3c1   :  { %v307_v37 = vmul.f32 2.0, %v1221_v36  ;;  %v312_v42 = vmul.f32 %v1221_v36, %v310_v41 }
 0x3c3   :  { %v1082_v38 = vadd.f32 -1.0, %v307_v37 }
 0x3c5   :  { %314 = vrot.lane.b32.xlu0 %v1082_v38, %s1287_s0 }
 0x437   :  { %v315_v39 = vpop.permute.xlu0 %314 }
 0x438   :  { %v317_v40 = vmul.f32 %v1221_v36, %v315_v39 }
 0x43a   :  { %319 = vrot.lane.b32.xlu1 %v317_v40, %s1288_s19 }
 0x4ac   :  { %v320_v43 = vpop.permute.xlu1 %319 }
 0x4ad   :  { %v322_v44 = vadd.f32 %v320_v43, %v312_v42 }
 0x4af   :  { %1222 = vtanh.f32 %v322_v44  ;;  %v418_v62 = vrot.slane %v322_v44, 6 }
 0x4bc   :  { %v1223_v45 = vpop.eup %1222 }
 0x4bd   :  { %325 = vrot.lane.b32.xlu0 %v1223_v45, %s1289_s20 }
 0x52f   :  { %v326_v46 = vpop.permute.xlu0 %325 }
 0x530   :  { %v328_v47 = vmul.f32 %v1221_v36, %v326_v46 }
 0x532   :  { %v330_v48 = vrot.slane %v328_v47, 2 }
 0x534   :  { %331 = vrot.lane.b32.xlu1 %v330_v48, %s1290_s21 }
 0x5a6   :  { %v332_v49 = vpop.permute.xlu1 %331 }
 0x5a7   :  { %1159 = vmatmul.mubr.msk.f32.vlgmr.msra.gmra.mxu1 %vm122_vm2, %v332_v49 }
 0x5a8   :  { %1169 = vmatpush3.msra.mxu1 %v1315_v3  ;;  %1172 = vmatprep.mubr.msk.f32.mxu1 %vm1286_vm0, %v1285_v0 }
 0x5a9   :  { %1170 = vmatprep.subr.mxu1 %v1285_v0 }
 0x5aa   :  { %1171 = vmatpush3.msra.mxu1 %v1320_v5 }
 0x5ab   :  { %1182 = vmatprep.subr.mxu1 %v1285_v0 }
 0x667   :  { %v401_v50 = vpop.f32.mrf.mxu1 }
 0x668   :  { %v406_v51 = vrot.slane %v401_v50, 4 }
 0x669   :  { %v1160_v52 = vpop.f32.mrf.mxu1 }
 0x66a   :  { %v408_v53 = vadd.f32 %v406_v51, %v1342_v11 }
 0x66c   :  { %v1084_v54 = vmul.f32 -1.442695, %v408_v53 }
 0x66e   :  { %1224 = vpow2.f32 %v1084_v54 }
 0x67b   :  { %v1225_v55 = vpop.eup %1224 }
 0x67c   :  { %v412_v56 = vadd.f32 1.0, %v1225_v55 }
 0x67e   :  { %1226 = vrcp.f32 %v412_v56 }
 0x68b   :  { %v1227_v57 = vpop.eup %1226 }
 0x68c   :  { %v415_v58 = vmul.f32 2.0, %v1227_v57  ;;  %v420_v63 = vmul.f32 %v1227_v57, %v418_v62 }
 0x68e   :  { %v1085_v59 = vadd.f32 -1.0, %v415_v58 }
 0x690   :  { %422 = vrot.lane.b32.xlu0 %v1085_v59, %s1287_s0 }
 0x702   :  { %v423_v60 = vpop.permute.xlu0 %422 }
 0x703   :  { %v425_v61 = vmul.f32 %v1227_v57, %v423_v60 }
 0x705   :  { %427 = vrot.lane.b32.xlu1 %v425_v61, %s1288_s19 }
 0x777   :  { %v428_v1 = vpop.permute.xlu1 %427 }
 0x778   :  { %v430_v2 = vadd.f32 %v428_v1, %v420_v63 }
 0x77a   :  { %1228 = vtanh.f32 %v430_v2  ;;  %v526_v24 = vrot.slane %v430_v2, 6 }
 0x787   :  { %v1229_v4 = vpop.eup %1228 }
 0x788   :  { %433 = vrot.lane.b32.xlu0 %v1229_v4, %s1289_s20 }
 0x7fa   :  { %v434_v6 = vpop.permute.xlu0 %433 }
 0x7fb   :  { %v436_v7 = vmul.f32 %v1227_v57, %v434_v6 }
 0x7fd   :  { %v438_v9 = vrot.slane %v436_v7, 4 }
 0x7ff   :  { %439 = vrot.lane.b32.xlu1 %v438_v9, %s1290_s21 }
 0x871   :  { %v440_v10 = vpop.permute.xlu1 %439 }
 0x872   :  { %1166 = vmatmul.mubr.msk.f32.vlgmr.msra.gmra.mxu0 %vm122_vm2, %v440_v10 }
 0x873   :  { %1176 = vmatpush3.msra.mxu0 %v1315_v3  ;;  %1179 = vmatprep.mubr.msk.f32.mxu0 %vm1286_vm0, %v1285_v0 }
 0x874   :  { %1177 = vmatprep.subr.mxu0 %v1285_v0 }
 0x875   :  { %1178 = vmatpush3.msra.mxu0 %v1320_v5 }
 0x876   :  { %1189 = vmatprep.subr.mxu0 %v1285_v0 }
 0x932   :  { %v509_v12 = vpop.f32.mrf.mxu0 }
 0x933   :  { %v514_v13 = vrot.slane %v509_v12, 2 }
 0x934   :  { %v1167_v14 = vpop.f32.mrf.mxu0 }
 0x935   :  { %v516_v15 = vadd.f32 %v514_v13, %v1342_v11 }
 0x937   :  { %v1087_v16 = vmul.f32 -1.442695, %v516_v15 }
 0x939   :  { %1230 = vpow2.f32 %v1087_v16 }
 0x946   :  { %v1231_v17 = vpop.eup %1230 }
 0x947   :  { %v520_v18 = vadd.f32 1.0, %v1231_v17 }
 0x949   :  { %1232 = vrcp.f32 %v520_v18 }
 0x956   :  { %v1233_v19 = vpop.eup %1232 }
 0x957   :  { %v523_v20 = vmul.f32 2.0, %v1233_v19  ;;  %v528_v25 = vmul.f32 %v1233_v19, %v526_v24 }
 0x959   :  { %v1088_v21 = vadd.f32 -1.0, %v523_v20 }
 0x95b   :  { %530 = vrot.lane.b32.xlu0 %v1088_v21, %s1287_s0 }
 0x9cd   :  { %v531_v22 = vpop.permute.xlu0 %530 }
 0x9ce   :  { %v533_v23 = vmul.f32 %v1233_v19, %v531_v22 }
 0x9d0   :  { %535 = vrot.lane.b32.xlu1 %v533_v23, %s1288_s19 }
 0xa42   :  { %v536_v26 = vpop.permute.xlu1 %535 }
 0xa43   :  { %v538_v27 = vadd.f32 %v536_v26, %v528_v25 }
 0xa45   :  { %1234 = vtanh.f32 %v538_v27  ;;  %v631_v43 = vrot.slane %v538_v27, 6 }
 0xa52   :  { %v1235_v11 = vpop.eup %1234 }
 0xa53   :  { %541 = vrot.lane.b32.xlu0 %v1235_v11, %s1289_s20 }
 0xac5   :  { %v542_v28 = vpop.permute.xlu0 %541 }
 0xac6   :  { %v544_v29 = vmul.f32 %v1233_v19, %v542_v28 }
 0xac8   :  { %v546_v30 = vrot.slane %v544_v29, 6 }
 0xaca   :  { %547 = vrot.lane.b32.xlu1 %v546_v30, %s1290_s21 }
 0xb3c   :  { %v548_v31 = vpop.permute.xlu1 %547 }
 0xb3d   :  { %1173 = vmatmul.mubr.msk.f32.vlgmr.msra.gmra.mxu1 %vm122_vm2, %v548_v31 }
 0xb3e   :  { %1183 = vmatpush3.msra.mxu1 %v1315_v3  ;;  %1186 = vmatprep.mubr.msk.f32.mxu1 %vm1286_vm0, %v1285_v0 }
 0xb3f   :  { %1184 = vmatprep.subr.mxu1 %v1285_v0 }
 0xb40   :  { %1185 = vmatpush3.msra.mxu1 %v1320_v5 }
 0xb41   :  { %1196 = vmatprep.subr.mxu1 %v1285_v0 }
 0xbfd   :  { %v617_v32 = vpop.f32.mrf.mxu1 }
 0xbfe   :  { %v621_v33 = vadd.f32 %v617_v32, %v1340_v8 }
 0xbff   :  { %v1174_v34 = vpop.f32.mrf.mxu1 }
 0xc00   :  { %v1090_v35 = vmul.f32 -1.442695, %v621_v33 }
 0xc02   :  { %1236 = vpow2.f32 %v1090_v35 }
 0xc0f   :  { %v1237_v36 = vpop.eup %1236 }
 0xc10   :  { %v625_v37 = vadd.f32 1.0, %v1237_v36 }
 0xc12   :  { %1238 = vrcp.f32 %v625_v37 }
 0xc1f   :  { %v1239_v38 = vpop.eup %1238 }
 0xc20   :  { %v628_v39 = vmul.f32 2.0, %v1239_v38  ;;  %v633_v44 = vmul.f32 %v1239_v38, %v631_v43 }
 0xc22   :  { %v1091_v40 = vadd.f32 -1.0, %v628_v39 }
 0xc24   :  { %635 = vrot.lane.b32.xlu0 %v1091_v40, %s1287_s0 }
 0xc96   :  { %v636_v41 = vpop.permute.xlu0 %635 }
 0xc97   :  { %v638_v42 = vmul.f32 %v1239_v38, %v636_v41 }
 0xc99   :  { %640 = vrot.lane.b32.xlu1 %v638_v42, %s1288_s19 }
 0xd0b   :  { %v641_v45 = vpop.permute.xlu1 %640 }
 0xd0c   :  { %v643_v46 = vadd.f32 %v641_v45, %v633_v44 }
 0xd0e   :  { %1240 = vtanh.f32 %v643_v46 }
 0xd1b   :  { %v1241_v47 = vpop.eup %1240 }
 0xd1c   :  { %646 = vrot.lane.b32.xlu0 %v1241_v47, %s1289_s20  ;;  %v31_v47 = vld [vmem:[#allocation2 + $0x20] sm:$0xff] }
 0xd8e   :  { %v647_v48 = vpop.permute.xlu0 %646 }
 0xd8f   :  { %v649_v49 = vmul.f32 %v1239_v38, %v647_v48 }
 0xd91   :  { %651 = vrot.lane.b32.xlu1 %v649_v49, %s1290_s21 }
 0xe03   :  { %v652_v50 = vpop.permute.xlu1 %651 }
 0xe04   :  { %1180 = vmatmul.mubr.msk.f32.vlgmr.msra.gmra.mxu0 %vm122_vm2, %v652_v50 }
 0xe05   :  { %1190 = vmatpush3.msra.mxu0 %v1315_v3  ;;  %1193 = vmatprep.mubr.msk.f32.mxu0 %vm1286_vm0, %v1285_v0 }
 0xe06   :  { %1191 = vmatprep.subr.mxu0 %v1285_v0 }
 0xe07   :  { %1192 = vmatpush3.msra.mxu0 %v1320_v5  ;;  %v738_v5 = vrot.slane %v643_v46, 6 }
 0xec4   :  { %v721_v51 = vpop.f32.mrf.mxu0 }
 0xec5   :  { %v726_v52 = vrot.slane %v721_v51, 6 }
 0xec6   :  { %v1181_v53 = vpop.f32.mrf.mxu0 }
 0xec7   :  { %v728_v54 = vadd.f32 %v726_v52, %v1340_v8  ;;  %v1101_v53 = vld [vmem:[#allocation2 + $0x30] ss:$0 sm:$0xff] }
 0xec9   :  { %v1093_v55 = vmul.f32 -1.442695, %v728_v54 }
 0xecb   :  { %1242 = vpow2.f32 %v1093_v55 }
 0xed8   :  { %v1243_v56 = vpop.eup %1242 }
 0xed9   :  { %v732_v57 = vadd.f32 1.0, %v1243_v56 }
 0xedb   :  { %1244 = vrcp.f32 %v732_v57  ;;  %v1103_v57 = vld [vmem:[#allocation2 + $0x31] ss:$0 sm:$0xff] }
 0xee8   :  { %v1245_v58 = vpop.eup %1244 }
 0xee9   :  { %v735_v59 = vmul.f32 2.0, %v1245_v58  ;;  %v740_v62 = vmul.f32 %v1245_v58, %v738_v5 }
 0xeeb   :  { %v1094_v3 = vadd.f32 -1.0, %v735_v59 }
 0xeed   :  { %742 = vrot.lane.b32.xlu0 %v1094_v3, %s1287_s0  ;;  %v1104_v3 = vld [vmem:[#allocation2 + $0x32] ss:$0 sm:$0xff] }
 0xf5f   :  { %v743_v60 = vpop.permute.xlu0 %742 }
 0xf60   :  { %v745_v61 = vmul.f32 %v1245_v58, %v743_v60 }
 0xf62   :  { %747 = vrot.lane.b32.xlu1 %v745_v61, %s1288_s19 }
 0xfd4   :  { %v748_v63 = vpop.permute.xlu1 %747 }
 0xfd5   :  { %v750_v1 = vadd.f32 %v748_v63, %v740_v62 }
 0xfd7   :  { %1246 = vtanh.f32 %v750_v1  ;;  %v846_v23 = vrot.slane %v750_v1, 6 }
 0xfe4   :  { %v1247_v2 = vpop.eup %1246 }
 0xfe5   :  { %753 = vrot.lane.b32.xlu0 %v1247_v2, %s1289_s20 }
0x1057   :  { %v754_v4 = vpop.permute.xlu0 %753 }
0x1058   :  { %v756_v6 = vmul.f32 %v1245_v58, %v754_v4 }
0x105a   :  { %v758_v7 = vrot.slane %v756_v6, 2 }
0x105c   :  { %759 = vrot.lane.b32.xlu1 %v758_v7, %s1290_s21 }
0x10ce   :  { %v760_v9 = vpop.permute.xlu1 %759 }
0x10cf   :  { %1187 = vmatmul.mubr.msk.f32.vlgmr.msra.gmra.mxu1 %vm122_vm2, %v760_v9 }
0x10d0   :  { %1200 = vmatprep.mubr.msk.f32.mxu1 %vm1286_vm0, %v1285_v0 }
0x118f   :  { %v829_v10 = vpop.f32.mrf.mxu1 }
0x1190   :  { %v834_v12 = vrot.slane %v829_v10, 4 }
0x1191   :  { %v1188_v13 = vpop.f32.mrf.mxu1 }
0x1192   :  { %v836_v14 = vadd.f32 %v834_v12, %v1340_v8 }
0x1194   :  { %v1096_v15 = vmul.f32 -1.442695, %v836_v14 }
0x1196   :  { %1248 = vpow2.f32 %v1096_v15 }
0x11a3   :  { %v1249_v16 = vpop.eup %1248 }
0x11a4   :  { %v840_v17 = vadd.f32 1.0, %v1249_v16 }
0x11a6   :  { %1250 = vrcp.f32 %v840_v17 }
0x11b3   :  { %v1251_v18 = vpop.eup %1250 }
0x11b4   :  { %v843_v19 = vmul.f32 2.0, %v1251_v18  ;;  %v848_v24 = vmul.f32 %v1251_v18, %v846_v23 }
0x11b6   :  { %v1097_v20 = vadd.f32 -1.0, %v843_v19 }
0x11b8   :  { %850 = vrot.lane.b32.xlu0 %v1097_v20, %s1287_s0 }
0x122a   :  { %v851_v21 = vpop.permute.xlu0 %850 }
0x122b   :  { %v853_v22 = vmul.f32 %v1251_v18, %v851_v21 }
0x122d   :  { %855 = vrot.lane.b32.xlu1 %v853_v22, %s1288_s19 }
0x129f   :  { %v856_v25 = vpop.permute.xlu1 %855 }
0x12a0   :  { %v858_v26 = vadd.f32 %v856_v25, %v848_v24 }
0x12a2   :  { %1252 = vtanh.f32 %v858_v26  ;;  %v954_v43 = vrot.slane %v858_v26, 6 }
0x12af   :  { %v1253_v27 = vpop.eup %1252 }
0x12b0   :  { %861 = vrot.lane.b32.xlu0 %v1253_v27, %s1289_s20 }
0x1322   :  { %v862_v11 = vpop.permute.xlu0 %861 }
0x1323   :  { %v864_v28 = vmul.f32 %v1251_v18, %v862_v11 }
0x1325   :  { %v866_v29 = vrot.slane %v864_v28, 4 }
0x1327   :  { %867 = vrot.lane.b32.xlu1 %v866_v29, %s1290_s21 }
0x1399   :  { %v868_v30 = vpop.permute.xlu1 %867 }
0x139a   :  { %1194 = vmatmul.mubr.msk.f32.vlgmr.msra.gmra.mxu0 %vm122_vm2, %v868_v30 }
0x145a   :  { %v937_v31 = vpop.f32.mrf.mxu0 }
0x145b   :  { %v942_v32 = vrot.slane %v937_v31, 2 }
0x145c   :  { %v1195_v33 = vpop.f32.mrf.mxu0 }
0x145d   :  { %v944_v34 = vadd.f32 %v942_v32, %v1340_v8  ;;  %v32_v8 = vld [vmem:[#allocation2 + $0x28] sm:$0xff] }
0x145e   :  { %1197 = vmatpush3.msra.mxu1 %v32_v8 }
0x145f   :  { %v1099_v35 = vmul.f32 -1.442695, %v944_v34  ;;  %1198 = vmatprep.subr.mxu1 %v1285_v0 }
0x1460   :  { %1199 = vmatpush3.msra.mxu1 %v31_v47 }
0x1461   :  { %1254 = vpow2.f32 %v1099_v35 }
0x146e   :  { %v1255_v36 = vpop.eup %1254 }
0x146f   :  { %v948_v37 = vadd.f32 1.0, %v1255_v36 }
0x1471   :  { %1256 = vrcp.f32 %v948_v37 }
0x147e   :  { %v1257_v38 = vpop.eup %1256 }
0x147f   :  { %v951_v39 = vmul.f32 2.0, %v1257_v38  ;;  %v956_v44 = vmul.f32 %v1257_v38, %v954_v43 }
0x1481   :  { %v1100_v40 = vadd.f32 -1.0, %v951_v39 }
0x1483   :  { %958 = vrot.lane.b32.xlu0 %v1100_v40, %s1287_s0 }
0x14f5   :  { %v959_v41 = vpop.permute.xlu0 %958 }
0x14f6   :  { %v961_v42 = vmul.f32 %v1257_v38, %v959_v41 }
0x14f8   :  { %963 = vrot.lane.b32.xlu1 %v961_v42, %s1288_s19 }
0x156a   :  { %v964_v45 = vpop.permute.xlu1 %963 }
0x156b   :  { %v966_v46 = vadd.f32 %v964_v45, %v956_v44 }
0x156d   :  { %1258 = vtanh.f32 %v966_v46 }
0x157a   :  { %v1259_v48 = vpop.eup %1258 }
0x157b   :  { %969 = vrot.lane.b32.xlu0 %v1259_v48, %s1289_s20 }
0x15ed   :  { %v970_v49 = vpop.permute.xlu0 %969 }
0x15ee   :  { %v972_v50 = vmul.f32 %v1257_v38, %v970_v49 }
0x15f0   :  { %v978_v51 = vrot.slane %v972_v50, 6 }
0x15f2   :  { %979 = vrot.lane.b32.xlu1 %v978_v51, %s1290_s21 }
0x1664   :  { %v980_v52 = vpop.permute.xlu1 %979 }
0x1665   :  { %1201 = vmatmul.mubr.msk.f32.vlgmr.msra.gmra.mxu1 %vm122_vm2, %v980_v52 }
0x1725   :  { %v1049_v54 = vpop.f32.mrf.mxu1 }
0x1726   :  { %v1050_v55 = vadd.f32 %v1101_v53, %v1049_v54 }
0x1727   :  { %v1202_v56 = vpop.f32.mrf.mxu1 }
0x1728   :  { %v1053_v58 = vmax.f32 %v1050_v55, 0.0 }
0x172a   :  { %v1058_v0 = vmul.f32 %v1103_v57, %v1053_v58 }
0x172c   :  { %v1060_v59 = vsel %vm1059_vm3, %v1058_v0, 0.0 }
0x172d   :  { %1061 = vadd.xlane.f32.xlu0 %v1060_v59 }
0x17b6   :  { %v1062_v60 = vpop.xlane.xlu0 %1061 }
0x17b7   :  { %v1067_v61 = vadd.f32 %v1104_v3, %v1062_v60 }
0x17b9   :  { %1069 = vst.msk [vmem:[%s1429_s2] sm:$0x3] %vm1068_vm4, %v1067_v61 }
0x17ba   :  { %1074 = vsyncpa [#allocation3], 1 }

</bundles_post_ra>
